<compile_context>
chip_gen: v7x
topology: tpu7x:2x2x1
jax: 0.10.0
libtpu: 0.0.40
codegen_flags: <defaults>
</compile_context>

<pallas_src>
import functools
import math

import jax
import jax.numpy as jnp
from jax.experimental import pallas as pl
from jax.experimental.pallas import tpu as pltpu


_CLAMP_MIN = 1e-7


def _device_config():
    """Tile / VMEM / core-count constants per TPU generation."""
    kind = ""
    try:
        kind = jax.devices()[0].device_kind.lower()
    except Exception:
        pass
    is_v7 = ("v7" in kind) or ("7x" in kind)
    if is_v7:
        # 64 MiB physical VMEM per TC, 3.2 TB/s HBM, 2 TensorCores per chip.
        return {"tile_bytes": 4 << 20, "vmem_limit": 48 << 20, "num_cores": 2}
    # v5e / v6e: 128 MiB physical VMEM, 1 TensorCore.
    return {"tile_bytes": 8 << 20, "vmem_limit": 64 << 20, "num_cores": 1}


def _round_up(x: int, m: int) -> int:
    return ((x + m - 1) // m) * m


def _pnorm_kernel(x_ref, o_ref, *, p, n_rows, tile_n, tiles_per_part, needs_mask):
    part = pl.program_id(0)
    t = pl.program_id(1)

    # Zero this part's VMEM-resident partial-sum block on its first tile.
    @pl.when(t == 0)
    def _():
        o_ref[...] = jnp.zeros_like(o_ref)

    x = x_ref[...].astype(jnp.float32)                        # (tile_n, C)
    xs = x - jnp.max(x, axis=-1, keepdims=True)               # per-row, <= 0

    if p == 0.5:
        # Specialized default-p path: one exp/element + per-row rsqrt.
        #   clamp(softmax, 1e-7, 1)**0.5 == max(sqrt(e/S), sqrt(1e-7))
        y = jnp.exp(0.5 * xs)                                  # y = sqrt(exp(xs))
        e = y * y                                              # exp(xs), VPU multiply
        s = jnp.sum(e, axis=-1, keepdims=True)                 # per-row sum
        pw = jnp.maximum(y * jax.lax.rsqrt(s), _CLAMP_MIN ** 0.5)
    else:
        # General p: fused in the exponent domain.
        #   clamp(softmax, 1e-7, 1)**p == exp(p * max(log_softmax, log 1e-7))
        # (upper clamp redundant: log_softmax <= 0).
        e = jnp.exp(xs)                                        # 1 exp / element
        lse = jnp.log(jnp.sum(e, axis=-1, keepdims=True))      # 1 log / row
        log_sm = jnp.maximum(xs - lse, math.log(_CLAMP_MIN))
        pw = jnp.exp(p * log_sm)                               # 1 exp / element

    row_sum = jnp.sum(pw, axis=-1, keepdims=True)              # (tile_n, 1)

    if needs_mask:
        row0 = (part * tiles_per_part + t) * tile_n
        is_partial = row0 + tile_n > n_rows

        # Only tiles that extend past the true batch pay for the iota + select; the
        # select (not a multiply) also kills NaN/Inf from garbage rows of a partial
        # trailing block.
        @pl.when(is_partial)
        def _():
            rows = row0 + jax.lax.broadcasted_iota(jnp.int32, (tile_n, 1), 0)
            o_ref[...] += jnp.sum(jnp.where(rows < n_rows, row_sum, 0.0))

        @pl.when(jnp.logical_not(is_partial))
        def _():
            o_ref[...] += jnp.sum(row_sum)
    else:
        o_ref[...] += jnp.sum(row_sum)


def pnorm(pred: jax.Array, p: float = 0.5, max_tile_rows: int = 1 << 20,
          num_parts: int | None = None) -> jax.Array:
    """Pallas equivalent of pNorm(p).forward(pred) for pred of shape (N, C)."""
    N, C = pred.shape
    cfg = _device_config()
    itemsize = pred.dtype.itemsize

    # DMA-byte-aware row budget for the input tile (bf16 preds get 2x rows) ...
    rows_dma = cfg["tile_bytes"] // (C * itemsize)
    # ... capped so 2x double-buffered input + ~4x f32 intermediates fit scoped VMEM.
    per_row_bytes = C * (2 * itemsize + 4 * 4)
    rows_fit = (3 * cfg["vmem_limit"] // 4) // per_row_bytes
    tile_n = max(8, (min(rows_dma, rows_fit, max_tile_rows) // 8) * 8)
    tile_n = min(tile_n, _round_up(N, 8))

    total_tiles = pl.cdiv(N, tile_n)
    if num_parts is None:
        num_parts = cfg["num_cores"]            # 2 on v7x, 1 on v5e/v6e
    num_parts = max(1, min(num_parts, total_tiles))
    tiles_per_part = pl.cdiv(total_tiles, num_parts)
    last_block = total_tiles - 1
    # Masking needed if the last block overhangs N, or the 2-part split has padded steps.
    needs_mask = (N % tile_n != 0) or (num_parts * tiles_per_part != total_tiles)

    kernel = functools.partial(
        _pnorm_kernel, p=float(p), n_rows=N, tile_n=tile_n,
        tiles_per_part=tiles_per_part, needs_mask=needs_mask)

    def in_index_map(part, t):
        # Clamp so padded steps (odd tile count, 2 parts) never DMA a block that
        # starts entirely past N; their contribution is masked to zero in-kernel.
        return (jnp.minimum(part * tiles_per_part + t, last_block), 0)

    partial_blocks = pl.pallas_call(
        kernel,
        out_shape=jax.ShapeDtypeStruct((num_parts, 8, 128), jnp.float32),
        grid_spec=pltpu.PrefetchScalarGridSpec(
            num_scalar_prefetch=0,
            grid=(num_parts, tiles_per_part),
            in_specs=[pl.BlockSpec((tile_n, C), in_index_map)],
            out_specs=pl.BlockSpec((1, 8, 128), lambda part, t: (part, 0, 0)),
        ),
        compiler_params=pltpu.CompilerParams(
            dimension_semantics=("parallel", "arbitrary"),
            vmem_limit_bytes=cfg["vmem_limit"],
        ),
    )(pred)

    # Every element of part i's block holds part i's partial sum; combine + batch mean.
    return jnp.sum(partial_blocks[:, 0, 0]) / jnp.float32(N)


def _pnorm_ref(pred: jax.Array, p: float = 0.5) -> jax.Array:
    sm = jax.nn.softmax(pred.astype(jnp.float32), axis=1)
    sm = jnp.clip(sm, 1e-7, 1.0)
    return jnp.mean(jnp.sum(sm ** p, axis=1))


if __name__ == "__main__":
    key = jax.random.PRNGKey(0)

    # Small shape consistent with the module: batch N=8 rows of C=32 class logits.
    # TODO(synk): production C < 128 underfills the 128-lane axis; a transposed
    # (C on sublanes) layout would fix it but is unnecessary when C >= 128.
    pred = jax.random.normal(key, (8, 32), dtype=jnp.float32)
    out = pnorm(pred, p=0.5)
    jax.block_until_ready(out)
    ref = _pnorm_ref(pred, p=0.5)
    assert jnp.allclose(out, ref, rtol=1e-5, atol=1e-5), (out, ref)

    # Odd tile count with a forced 2-part split (v7x megacore path): exercises the
    # clamped index_map + fully-masked padded step.
    pred2 = jax.random.normal(jax.random.PRNGKey(1), (40, 32), dtype=jnp.float32)
    out2 = pnorm(pred2, p=0.5, max_tile_rows=8, num_parts=2)
    jax.block_until_ready(out2)
    ref2 = _pnorm_ref(pred2, p=0.5)
    assert jnp.allclose(out2, ref2, rtol=1e-5, atol=1e-5), (out2, ref2)

    # Ragged batch (N not a multiple of the tile): partial trailing block with
    # garbage rows, killed by the in-kernel select mask (no wrapper pad anymore).
    pred3 = jax.random.normal(jax.random.PRNGKey(2), (43, 32), dtype=jnp.float32)
    out3 = pnorm(pred3, p=0.5, max_tile_rows=8)
    jax.block_until_ready(out3)
    ref3 = _pnorm_ref(pred3, p=0.5)
    assert jnp.allclose(out3, ref3, rtol=1e-5, atol=1e-5), (out3, ref3)

    # Non-default p (PyTorch forward allows overriding p) -> general log-domain path.
    out4 = pnorm(pred, p=0.7)
    jax.block_until_ready(out4)
    ref4 = _pnorm_ref(pred, p=0.7)
    assert jnp.allclose(out4, ref4, rtol=1e-5, atol=1e-5), (out4, ref4)

    print("KERNEL_OK")
</pallas_src>

<mosaic_0001>
module attributes {stable_mosaic.version = 11 : i64} {
  func.func @_pnorm_kernel(%arg0: i32, %arg1: i32, %arg2: memref<8x32xf32, #tpu.memory_space<vmem>>, %arg3: memref<1x8x128xf32, #tpu.memory_space<vmem>>) attributes {dimension_semantics = [#tpu.dimension_semantics<parallel>, #tpu.dimension_semantics<arbitrary>], iteration_bounds = array<i64: 1, 1>, scalar_prefetch = 0 : i64, scratch_operands = 0 : i64, tpu.core_type = #tpu.core_type<tc>, window_params = [{transform_indices = @transform_0, window_bounds = array<i64: 8, 32>}, {transform_indices = @transform_1, window_bounds = array<i64: 1, 8, 128>}]} {
    %c0_i32 = arith.constant 0 : i32
    %0 = arith.cmpi eq, %arg1, %c0_i32 : i32
    %1 = arith.extui %0 : i1 to i32
    %c0_i32_0 = arith.constant 0 : i32
    %2 = arith.cmpi ne, %1, %c0_i32_0 : i32
    scf.if %2 {
      %cst_13 = arith.constant 0.000000e+00 : f32
      %29 = vector.broadcast %cst_13 : f32 to vector<1x8x128xf32>
      %c0_14 = arith.constant 0 : index
      %c0_15 = arith.constant 0 : index
      %c0_16 = arith.constant 0 : index
      %30 = vector.load %arg3[%c0_14, %c0_15, %c0_16] : memref<1x8x128xf32, #tpu.memory_space<vmem>>, vector<1x8x128xf32>
      tpu.vector_store %arg3[%c0_14, %c0_15, %c0_16], %29 {strides = array<i32>} : memref<1x8x128xf32, #tpu.memory_space<vmem>>, vector<1x8x128xf32>,
    } else {
    }
    %c0 = arith.constant 0 : index
    %c0_1 = arith.constant 0 : index
    %3 = vector.load %arg2[%c0, %c0_1] : memref<8x32xf32, #tpu.memory_space<vmem>>, vector<8x32xf32>
    %cst = arith.constant dense<0xFF800000> : vector<8xf32>
    %4 = vector.multi_reduction <maximumf>, %3, %cst [1] : vector<8x32xf32> to vector<8xf32>
    %5 = vector.shape_cast %4 : vector<8xf32> to vector<8x1xf32>
    %6 = vector.broadcast %5 : vector<8x1xf32> to vector<8x32xf32>
    %7 = arith.subf %3, %6 : vector<8x32xf32>
    %cst_2 = arith.constant 5.000000e-01 : f32
    %8 = vector.broadcast %cst_2 : f32 to vector<8x32xf32>
    %9 = arith.mulf %8, %7 : vector<8x32xf32>
    %10 = math.exp %9 : vector<8x32xf32>
    %11 = arith.mulf %10, %10 : vector<8x32xf32>
    %cst_3 = arith.constant dense<0.000000e+00> : vector<8xf32>
    %12 = vector.multi_reduction <add>, %11, %cst_3 [1] : vector<8x32xf32> to vector<8xf32>
    %13 = vector.shape_cast %12 : vector<8xf32> to vector<8x1xf32>
    %14 = math.rsqrt %13 : vector<8x1xf32>
    %15 = vector.broadcast %14 : vector<8x1xf32> to vector<8x32xf32>
    %16 = arith.mulf %10, %15 : vector<8x32xf32>
    %cst_4 = arith.constant 3.16227757E-4 : f32
    %17 = vector.broadcast %cst_4 : f32 to vector<8x32xf32>
    %18 = arith.maximumf %16, %17 : vector<8x32xf32>
    %cst_5 = arith.constant dense<0.000000e+00> : vector<8xf32>
    %19 = vector.multi_reduction <add>, %18, %cst_5 [1] : vector<8x32xf32> to vector<8xf32>
    %20 = vector.shape_cast %19 : vector<8xf32> to vector<8x1xf32>
    %c0_6 = arith.constant 0 : index
    %c0_7 = arith.constant 0 : index
    %c0_8 = arith.constant 0 : index
    %21 = vector.load %arg3[%c0_6, %c0_7, %c0_8] : memref<1x8x128xf32, #tpu.memory_space<vmem>>, vector<1x8x128xf32>
    %22 = vector.shape_cast %20 : vector<8x1xf32> to vector<1x8x1xf32>
    %cst_9 = arith.constant dense<0.000000e+00> : vector<1xf32>
    %23 = vector.multi_reduction <add>, %22, %cst_9 [1, 2] : vector<1x8x1xf32> to vector<1xf32>
    %24 = vector.shape_cast %23 : vector<1xf32> to vector<1x1x1xf32>
    %25 = vector.extract %24[0, 0, 0] : f32 from vector<1x1x1xf32>
    %26 = vector.broadcast %25 : f32 to vector<1x8x128xf32>
    %27 = arith.addf %21, %26 : vector<1x8x128xf32>
    %c0_10 = arith.constant 0 : index
    %c0_11 = arith.constant 0 : index
    %c0_12 = arith.constant 0 : index
    %28 = vector.load %arg3[%c0_10, %c0_11, %c0_12] : memref<1x8x128xf32, #tpu.memory_space<vmem>>, vector<1x8x128xf32>
    tpu.vector_store %arg3[%c0_10, %c0_11, %c0_12], %27 {strides = array<i32>} : memref<1x8x128xf32, #tpu.memory_space<vmem>>, vector<1x8x128xf32>,
    return
  }
  func.func @transform_0(%arg0: i32, %arg1: i32) -> (i32, i32) {
    %c1_i32 = arith.constant 1 : i32
    %0 = arith.muli %arg0, %c1_i32 : i32
    %1 = arith.addi %0, %arg1 : i32
    %c0_i32 = arith.constant 0 : i32
    %2 = arith.minsi %1, %c0_i32 : i32
    %c0_i32_0 = arith.constant 0 : i32
    %c0_i32_1 = arith.constant 0 : i32
    return %2, %c0_i32_0 : i32, i32
  }
  func.func @transform_1(%arg0: i32, %arg1: i32) -> (i32, i32, i32) {
    %c0_i32 = arith.constant 0 : i32
    %c0_i32_0 = arith.constant 0 : i32
    %c0_i32_1 = arith.constant 0 : i32
    return %arg0, %c0_i32, %c0_i32_0 : i32, i32, i32
  }
}

</mosaic_0001>

<bundles_post_ra>
// kernel: tpu_custom_call.1
= control target key start
LH: loop header
LB: loop body
LE: loop exit
PB: predicated region body
PF: predicated region fallthrough
CT: control target
= control target key end

     0   :  { %6 = vsyncpa [#allocation3], 0  ;;  %s181_s0 = inlined_call_operand.hbm [shape: f32[8,32], index: 0, kind: input, shape index: {}]   ;;  %s182_s1 = inlined_call_operand.hbm [shape: f32[1,8,128], index: 1, kind: output, shape index: {}]  }
   0x1   :  { %7 = vsyncpa [#allocation4], 0  ;;  %s142_s6 = smov [#allocation2]   ;;  %s94_s10 = scalar_lea.hbm %s181_s0, 128 }
   0x2   :  { %s19_s7 = sshll.u32 %s142_s6, 4  ;;  %p95_p0 = scmp.ne.s32.totalorder %s181_s0, %s94_s10  ;;  %s20_s7 = int_to_ptr.vmem [resolvable:$true] %s19_s7 }
   0x3   :  { %p98_p1 = scmp.lt.u32.totalorder %s94_s10, %s181_s0 }
   0x5   :  { %p100_p2 = pnand %p98_p1, %p95_p0 }
   0x7   :  { %103 = shalt.err (!%p100_p2)
}
   0x8   :  { %s104_s15 = scalar_lea.vmem %s20_s7, 128  ;;  %p109_p4 = scmp.lt.s32.totalorder %s20_s7, %s20_s7 }
   0x9   :  { %p105_p3 = scmp.ne.s32.totalorder %s20_s7, %s104_s15  ;;  %p110_p5 = scmp.lt.s32.totalorder %s104_s15, %s104_s15 }
   0xb   :  { %p111_p6 = por %p110_p5, %p109_p4 }
   0xd   :  { %p112_p7 = pnand %p111_p6, %p105_p3 }
   0xf   :  { %115 = shalt.err (!%p112_p7)
}
  0x10   :  { %22 = dma.hbm_to_vmem [thread:$0]  %s181_s0, 128, %s20_s7, [#allocation3]  }
  0x11   :  { %138 = dma.done.wait [#allocation3], 128  }
  0x12   :  { %139 = vsyncadd [#allocation3], 4294967168  ;;  %vm35_vm0 = vcmask 261120   ;;  %v34_v0 = vld [vmem:[#allocation2] sm:$0xff]  ;;  %vm54_vm1 = vcmask 7168   ;;  %s143_s0 = smov [#allocation5]  }
  0x13   :  { %v36_v1 = vsel %vm35_vm0, %v34_v0, -inf  ;;  %s74_s18 = sshll.u32 %s143_s0, 4  ;;  %s75_s18 = int_to_ptr.vmem [resolvable:$true] %s74_s18 }
  0x14   :  { %37 = vmax.xlane.f32.xlu0 %v36_v1  ;;  %s116_s20 = scalar_lea.vmem %s75_s18, 128  ;;  %p121_p9 = scmp.lt.s32.totalorder %s75_s18, %s75_s18 }
  0x15   :  { %p117_p8 = scmp.ne.s32.totalorder %s75_s18, %s116_s20  ;;  %p122_p10 = scmp.lt.s32.totalorder %s116_s20, %s116_s20 }
  0x17   :  { %p123_p11 = por %p122_p10, %p121_p9 }
  0x19   :  { %p124_p12 = pnand %p123_p11, %p117_p8 }
  0xa1   :  { %v38_v2 = vpop.xlane.xlu0 %37 }
  0xa2   :  { %v39_v3 = vsub.f32 %v34_v0, %v38_v2 }
  0xa4   :  { %v40_v4 = vmul.f32 0.5, %v39_v3 }
  0xa6   :  { %v41_v5 = vmul.f32 1.442695, %v40_v4 }
  0xa8   :  { %90 = vpow2.f32 %v41_v5 }
  0xb2   :  { %v91_v6 = vpop.eup %90 }
  0xb3   :  { %v43_v7 = vmul.f32 %v91_v6, %v91_v6 }
  0xb5   :  { %v44_v8 = vsel %vm35_vm0, %v43_v7, 0.0 }
  0xb6   :  { %45 = vadd.xlane.f32.xlu0 %v44_v8 }
 0x143   :  { %v46_v9 = vpop.xlane.xlu0 %45 }
 0x144   :  { %92 = vrsqrt.f32 %v46_v9 }
 0x14e   :  { %v93_v10 = vpop.eup %92 }
 0x14f   :  { %v48_v11 = vmul.f32 %v93_v10, %v91_v6 }
 0x151   :  { %v49_v12 = vmax.f32 %v48_v11, 0.00031622776 }
 0x153   :  { %v50_v13 = vsel %vm35_vm0, %v49_v12, 0.0 }
 0x154   :  { %51 = vadd.xlane.f32.xlu1 %v50_v13 }
 0x1e1   :  { %v52_v14 = vpop.xlane.xlu1 %51 }
 0x1e2   :  { %v55_v15 = vsel %vm54_vm1, %v52_v14, 0.0 }
 0x1e3   :  { %56 = vadd.xlane.f32.xlu1 %v55_v15 }
 0x270   :  { %v57_v16 = vpop.xlane.xlu1 %56 }
 0x271   :  { %v58_v17 = vrot.slane %v57_v16, 4 }
 0x273   :  { %v59_v18 = vadd.f32 %v58_v17, %v57_v16 }
 0x275   :  { %v60_v19 = vrot.slane %v59_v18, 2 }
 0x277   :  { %v61_v20 = vadd.f32 %v60_v19, %v59_v18 }
 0x279   :  { %v62_v21 = vrot.slane %v61_v20, 1 }
 0x27b   :  { %v63_v22 = vadd.f32 %v62_v21, %v61_v20 }
 0x27d   :  { %85 = vpush %v63_v22 }
 0x2ae   :  { %s86_s19 = spop %85 }
 0x2af   :  { %v65_v23 = vstv %s86_s19 }
 0x2b0   :  { %67 = vst [vmem:[#allocation5] sm:$0xff] %v65_v23 }
 0x2b1   :  { %127 = shalt.err (!%p124_p12)
}
 0x2b2   :  { %s128_s23 = scalar_lea.hbm %s182_s1, 128 }
 0x2b3   :  { %p129_p13 = scmp.ne.s32.totalorder %s182_s1, %s128_s23  ;;  %p132_p0 = scmp.lt.u32.totalorder %s128_s23, %s182_s1 }
 0x2b5   :  { %p134_p1 = pnand %p132_p0, %p129_p13 }
 0x2b7   :  { %137 = shalt.err (!%p134_p1)
}
 0x2b8   :  { %77 = dma.vmem_to_hbm [thread:$0]  %s75_s18, 128, %s182_s1, [#allocation4]  }
 0x2b9   :  { %140 = dma.done.wait [#allocation4], 128  }
 0x2ba   :  { %141 = vsyncadd [#allocation4], 4294967168 }
 0x2bb   :  { %81 = vsyncpa [#allocation3], 1 }
 0x2bc   :  { %82 = vsyncpa [#allocation4], 1 }

</bundles_post_ra>
